<compile_context>
chip_gen: v7x
topology: tpu7x:2x2x1
jax: 0.10.0
libtpu: 0.0.40
codegen_flags: <defaults>
</compile_context>

<pallas_src>
import functools
import math

import jax
import jax.numpy as jnp
from jax import lax
from jax.experimental import pallas as pl
from jax.experimental.pallas import tpu as pltpu


def _xlogx(v: float) -> float:
    return v * math.log(v) if v > 0.0 else 0.0


def _label_smoothing_kernel(x_ref, tgt_ref, out_ref, *,
                            confidence, smooth_val, const_per_row, padding_idx):
    # x: (TN, V) log-probabilities; tgt: (TN, 1) int32 class indices.
    x = x_ref[...].astype(jnp.float32)
    tgt = tgt_ref[...]

    # Weighted row sum: w = confidence at the target column, smooth elsewhere.
    col = lax.broadcasted_iota(jnp.int32, x.shape, 1)
    w = jnp.where(col == tgt, confidence, smooth_val)
    wx_sum = jnp.sum(w * x, axis=1, keepdims=True)              # (TN, 1)

    # The padding column carries zero true-probability -> remove its smooth
    # contribution (static slice; padding_idx is a compile-time Python int).
    x_pad = x[:, padding_idx:padding_idx + 1]                   # (TN, 1)

    row_loss = const_per_row - (wx_sum - smooth_val * x_pad)    # (TN, 1)
    # Rows whose target is the padding index contribute nothing.
    row_loss = jnp.where(tgt != padding_idx, row_loss, 0.0)

    out_ref[...] = row_loss.astype(out_ref.dtype)


def _pick_row_tile(n_rows, vocab, itemsize, block_bytes):
    """Largest multiple-of-8 row tile whose x block is <= block_bytes."""
    max_rows = max(8, min(block_bytes // max(vocab * itemsize, 1), n_rows))
    max_rows = max(8, (max_rows // 8) * 8)
    if n_rows % 8 == 0:
        # Prefer a divisor of N so no padding copy is needed.
        for cand in range(max_rows, 7, -8):
            if n_rows % cand == 0:
                return cand
    return max_rows


def label_smoothing_loss(x, target, *, size, padding_idx, smoothing=0.0,
                         row_tile=None, block_bytes=4 * 1024 * 1024):
    """Equivalent of LabelSmoothing(size, padding_idx, smoothing)(x, target)."""
    N, V = x.shape
    assert V == size
    assert size > 2, "label smoothing requires size > 2 (divides by size - 2)"

    confidence = 1.0 - float(smoothing)
    smooth_val = float(smoothing) / (size - 2)
    # Constant part of the KL per valid row: conf*log(conf) + (V-2)*s*log(s).
    const_per_row = _xlogx(confidence) + (size - 2) * _xlogx(smooth_val)

    if row_tile is None:
        row_tile = _pick_row_tile(N, V, x.dtype.itemsize, block_bytes)
    assert row_tile % 8 == 0, "row_tile must be a multiple of 8 (f32 sublane tiling)"

    # Pad rows so the grid divides evenly; padded rows use target=padding_idx
    # and therefore contribute exactly zero.
    n_blocks = pl.cdiv(N, row_tile)
    n_padded = n_blocks * row_tile
    target = target.reshape(-1).astype(jnp.int32)
    if n_padded != N:
        x = jnp.pad(x, ((0, n_padded - N), (0, 0)))
        target = jnp.pad(target, ((0, n_padded - N),), constant_values=padding_idx)
    tgt2d = target.reshape(n_padded, 1)

    kernel = functools.partial(
        _label_smoothing_kernel,
        confidence=float(confidence),          # plain Python scalars: no captured
        smooth_val=float(smooth_val),          # tracer constants in the kernel
        const_per_row=float(const_per_row),
        padding_idx=int(padding_idx),
    )

    per_row = pl.pallas_call(
        kernel,
        out_shape=jax.ShapeDtypeStruct((n_padded, 1), jnp.float32),
        grid_spec=pltpu.PrefetchScalarGridSpec(
            num_scalar_prefetch=0,
            grid=(n_blocks,),
            in_specs=[
                pl.BlockSpec((row_tile, V), lambda i: (i, 0)),
                pl.BlockSpec((row_tile, 1), lambda i: (i, 0)),
            ],
            out_specs=pl.BlockSpec((row_tile, 1), lambda i: (i, 0)),
        ),
        compiler_params=pltpu.CompilerParams(
            dimension_semantics=("parallel",),       # independent blocks -> megacore OK
            vmem_limit_bytes=32 * 1024 * 1024,       # headroom on v5e's 16 MiB default
        ),
    )(x, tgt2d)

    # Tiny final reduction (N values) outside the kernel.
    return jnp.sum(per_row, dtype=jnp.float32)


def _reference(x, target, *, size, padding_idx, smoothing):
    confidence = 1.0 - smoothing
    smooth_val = smoothing / (size - 2)
    col = jnp.arange(size)[None, :]
    tgt = target[:, None]
    t = jnp.where(col == tgt, confidence, smooth_val)
    t = jnp.where(col == padding_idx, 0.0, t)
    t = jnp.where(tgt == padding_idx, 0.0, t)
    term = jnp.where(t > 0, t * (jnp.log(jnp.where(t > 0, t, 1.0)) - x), 0.0)
    return jnp.sum(term)


if __name__ == "__main__":
    SIZE = 512         # vocab size (x.size(1))
    N = 128            # number of tokens
    PADDING_IDX = 0
    SMOOTHING = 0.1

    key = jax.random.PRNGKey(0)
    k1, k2, k3, k4 = jax.random.split(key, 4)

    logits = jax.random.normal(k1, (N, SIZE), dtype=jnp.float32)
    x = jax.nn.log_softmax(logits, axis=-1)              # KLDivLoss expects log-probs
    target = jax.random.randint(k2, (N,), 0, SIZE, dtype=jnp.int32)
    target = target.at[3].set(PADDING_IDX)               # exercise padded-row masking
    target = target.at[77].set(PADDING_IDX)

    ref = _reference(x, target, size=SIZE, padding_idx=PADDING_IDX, smoothing=SMOOTHING)

    # Multi-step pipelined grid (explicit tile).
    loss = label_smoothing_loss(x, target, size=SIZE, padding_idx=PADDING_IDX,
                                smoothing=SMOOTHING, row_tile=32)
    loss = jax.block_until_ready(loss)
    assert jnp.allclose(loss, ref, rtol=1e-4, atol=1e-2), (loss, ref)

    # Automatic tile selection.
    loss_auto = jax.block_until_ready(
        label_smoothing_loss(x, target, size=SIZE, padding_idx=PADDING_IDX,
                             smoothing=SMOOTHING))
    assert jnp.allclose(loss_auto, ref, rtol=1e-4, atol=1e-2), (loss_auto, ref)

    # Ragged N (not a multiple of 8) exercising the internal padding path.
    N2 = 100
    logits2 = jax.random.normal(k3, (N2, SIZE), dtype=jnp.float32)
    x2 = jax.nn.log_softmax(logits2, axis=-1)
    target2 = jax.random.randint(k4, (N2,), 0, SIZE, dtype=jnp.int32)
    target2 = target2.at[0].set(PADDING_IDX)
    ref2 = _reference(x2, target2, size=SIZE, padding_idx=PADDING_IDX, smoothing=SMOOTHING)
    loss2 = jax.block_until_ready(
        label_smoothing_loss(x2, target2, size=SIZE, padding_idx=PADDING_IDX,
                             smoothing=SMOOTHING))
    assert jnp.allclose(loss2, ref2, rtol=1e-4, atol=1e-2), (loss2, ref2)

    print("KERNEL_OK")
</pallas_src>

<mosaic_0001>
module attributes {stable_mosaic.version = 11 : i64} {
  func.func @_label_smoothing_kernel(%arg0: i32, %arg1: memref<32x512xf32, #tpu.memory_space<vmem>>, %arg2: memref<32x1xi32, #tpu.memory_space<vmem>>, %arg3: memref<32x1xf32, #tpu.memory_space<vmem>>) attributes {dimension_semantics = [#tpu.dimension_semantics<parallel>], iteration_bounds = array<i64: 4>, scalar_prefetch = 0 : i64, scratch_operands = 0 : i64, tpu.core_type = #tpu.core_type<tc>, window_params = [{transform_indices = @transform_0, window_bounds = array<i64: 32, 512>}, {transform_indices = @transform_1, window_bounds = array<i64: 32, 1>}, {transform_indices = @transform_2, window_bounds = array<i64: 32, 1>}]} {
    %c0 = arith.constant 0 : index
    %c0_0 = arith.constant 0 : index
    %0 = vector.load %arg1[%c0, %c0_0] : memref<32x512xf32, #tpu.memory_space<vmem>>, vector<32x512xf32>
    %c0_1 = arith.constant 0 : index
    %c0_2 = arith.constant 0 : index
    %1 = vector.load %arg2[%c0_1, %c0_2] : memref<32x1xi32, #tpu.memory_space<vmem>>, vector<32x1xi32>
    %2 = tpu.iota {dimensions = array<i32: 1>} : vector<32x512xi32>
    %3 = vector.broadcast %1 : vector<32x1xi32> to vector<32x512xi32>
    %4 = arith.cmpi eq, %2, %3 : vector<32x512xi32>
    %cst = arith.constant 0.899999976 : f32
    %cst_3 = arith.constant 1.96078428E-4 : f32
    %5 = vector.broadcast %cst : f32 to vector<32x512xf32>
    %6 = vector.broadcast %cst_3 : f32 to vector<32x512xf32>
    %7 = arith.select %4, %5, %6 : vector<32x512xi1>, vector<32x512xf32>
    %8 = arith.mulf %7, %0 : vector<32x512xf32>
    %cst_4 = arith.constant dense<0.000000e+00> : vector<32xf32>
    %9 = vector.multi_reduction <add>, %8, %cst_4 [1] : vector<32x512xf32> to vector<32xf32>
    %10 = vector.shape_cast %9 : vector<32xf32> to vector<32x1xf32>
    %11 = vector.extract_strided_slice %0 {offsets = [0, 0], sizes = [32, 1], strides = [1, 1]} : vector<32x512xf32> to vector<32x1xf32>
    %cst_5 = arith.constant 1.96078428E-4 : f32
    %12 = vector.broadcast %cst_5 : f32 to vector<32x1xf32>
    %13 = arith.mulf %12, %11 : vector<32x1xf32>
    %14 = arith.subf %10, %13 : vector<32x1xf32>
    %cst_6 = arith.constant -0.948524057 : f32
    %15 = vector.broadcast %cst_6 : f32 to vector<32x1xf32>
    %16 = arith.subf %15, %14 : vector<32x1xf32>
    %c0_i32 = arith.constant 0 : i32
    %17 = vector.broadcast %c0_i32 : i32 to vector<32x1xi32>
    %18 = arith.cmpi ne, %1, %17 : vector<32x1xi32>
    %cst_7 = arith.constant 0.000000e+00 : f32
    %19 = vector.broadcast %cst_7 : f32 to vector<32x1xf32>
    %20 = arith.select %18, %16, %19 : vector<32x1xi1>, vector<32x1xf32>
    %c0_8 = arith.constant 0 : index
    %c0_9 = arith.constant 0 : index
    %21 = vector.load %arg3[%c0_8, %c0_9] : memref<32x1xf32, #tpu.memory_space<vmem>>, vector<32x1xf32>
    tpu.vector_store %arg3[%c0_8, %c0_9], %20 {strides = array<i32>} : memref<32x1xf32, #tpu.memory_space<vmem>>, vector<32x1xf32>,
    return
  }
  func.func @transform_0(%arg0: i32) -> (i32, i32) {
    %c0_i32 = arith.constant 0 : i32
    %c0_i32_0 = arith.constant 0 : i32
    return %arg0, %c0_i32 : i32, i32
  }
  func.func @transform_1(%arg0: i32) -> (i32, i32) {
    %c0_i32 = arith.constant 0 : i32
    %c0_i32_0 = arith.constant 0 : i32
    return %arg0, %c0_i32 : i32, i32
  }
  func.func @transform_2(%arg0: i32) -> (i32, i32) {
    %c0_i32 = arith.constant 0 : i32
    %c0_i32_0 = arith.constant 0 : i32
    return %arg0, %c0_i32 : i32, i32
  }
}

</mosaic_0001>

<bundles_post_ra>
// kernel: tpu_custom_call.1
= control target key start
LH: loop header
LB: loop body
LE: loop exit
PB: predicated region body
PF: predicated region fallthrough
CT: control target
= control target key end

     0   :  { %7 = vsyncpa [#allocation3], 0  ;;  %s738_s0 = inlined_call_operand.hbm [shape: f32[128,512], index: 0, kind: input, shape index: {}]   ;;  %s739_s1 = inlined_call_operand.vmem [shape: s32[128,1], index: 1, kind: input, shape index: {}]   ;;  %s740_s2 = inlined_call_operand.vmem [shape: f32[128,1], index: 2, kind: output, shape index: {}]  }
   0x1   :  { %9 = vsyncpa [#allocation3 + $0x1], 0  ;;  %s547_s9 = smov 0   ;;  %s549_s10 = smov 0  }
   0x2   :  { %s551_s11 = smov 0   ;;  %s553_s12 = smov 0  }
   0x3 LB: > { %s398_s13 = sadd.s32 4294967295, %s525_s12   ;;  %s567_s14 = sadd.s32 1, %s525_s12   ;;  %s525_s12 = sphi %s553_s12, %s747_s12   ;;  %s521_s11 = sphi %s551_s11, %s746_s11   ;;  %s517_s10 = sphi %s549_s10, %s745_s10   ;;  %s513_s9 = sphi %s547_s9, %s744_s9  }
   0x4   : > { %s19_s15 = ssub.s32 %s525_s12, %s567_s14  ;;  %s22_s16 = sadd.s32 1, %s521_s11 }
   0x5   : > { %p20_p0 = scmp.eq.s32.totalorder %s19_s15, 0  ;;  %p29_p1 = scmp.ne.s32.totalorder %s521_s11, %s517_s10 }
   0x6   : > { %p30_p2 = scmp.eq.s32.totalorder %s525_s12, 0  ;;  %p35_p3 = scmp.ne.s32.totalorder %s517_s10, %s513_s9 }
   0x7   : > { %s577_s17 = scalar_select %p20_p0, %s521_s11, %s22_s16  }
   0x8   : > { %p31_p4 = por %p30_p2, %p29_p1  ;;  %p36_p5 = scmp.eq.s32.totalorder %s398_s13, 0 }
   0x9   : > { %p422_p6 = scmp.lt.s32.totalorder %s525_s12, 4  ;;  %s111_s19 = sand.u32 1, %s521_s11  }
   0xa   : > { %p582_p7 = por %p36_p5, %p35_p3  ;;  %s402_s20 = sshll.u32 %s111_s19, 7 }
   0xb   : > { %s415_s21 = sshll.u32 %s525_s12, 11  ;;  %s115_s25 = scalar_lea.vmem [#allocation2], %s402_s20 }
   0xc   : > { %s591_s24 = scalar_lea.hbm %s738_s0, %s415_s21  ;;  %s123_s26 = sshll.u32 %s115_s25, 4  ;;  %s593_s26 = int_to_ptr.vmem [resolvable:$true] %s123_s26 }
   0xd   : > { %p595_p8 = pnand %p422_p6, %p31_p4  ;;  %s600_s28 = scalar_lea.sflag [#allocation3], %s111_s19 }
   0xe   : > { %s461_s29 = scalar_lea.hbm %s591_s24, 2048  ;;  %s466_s4 = scalar_lea.hbm %s738_s0, 8192 }
   0xf   : > { %p462_p10 = scmp.ne.s32.totalorder %s591_s24, %s461_s29  ;;  %p463_p11 = pneg %p595_p8 }
  0x10   : > { %p467_p0 = scmp.lt.u32.totalorder %s591_s24, %s738_s0  ;;  %p468_p1 = scmp.lt.u32.totalorder %s466_s4, %s461_s29 }
  0x11   : > { %p464_p12 = pnand %p463_p11, %p462_p10  ;;  %p470_p3 = scmp.lt.u32.totalorder %s461_s29, %s591_s24 }
  0x12   : > { %p469_p2 = por %p468_p1, %p467_p0 }
  0x13   : > { %p465_p13 = pneg %p464_p12 }
  0x14   : > { %p471_p4 = por %p470_p3, %p469_p2 }
  0x16   : > { %p472_p5 = pnand %p471_p4, %p465_p13 }
  0x18   : > { %475 = shalt.err (!%p472_p5)
}
  0x19   : > { %s476_s7 = scalar_lea.vmem %s593_s26, 2048  ;;  %s527_s8 = smov [#allocation2]  }
  0x1a   : > { %p477_p6 = scmp.ne.s32.totalorder %s593_s26, %s476_s7  ;;  %s481_s9 = sshll.u32 %s527_s8, 4  ;;  %s482_s9 = int_to_ptr.vmem [resolvable:$false] %s481_s9 }
  0x1b   : > { %s483_s15 = scalar_lea.vmem %s482_s9, 4096  ;;  %p484_p9 = scmp.lt.s32.totalorder %s593_s26, %s482_s9 }
  0x1c   : > { %p479_p10 = pnand %p477_p6, %p463_p11  ;;  %p485_p0 = scmp.lt.s32.totalorder %s483_s15, %s476_s7 }
  0x1e   : > { %p480_p12 = pneg %p479_p10  ;;  %p486_p1 = por %p485_p0, %p484_p9 }
  0x20   : > { %p487_p2 = pnand %p486_p1, %p480_p12 }
  0x22   : > { %490 = shalt.err (!%p487_p2)
}
  0x23   : > { %s528_s16 = smov 512   ;;  %s529_s19 = smov 32  }
  0x24   : > { %421 = dma.hbm_to_vmem [thread:$0]  (!%p595_p8), %s591_s24, 2048, %s593_s26, %s600_s28, %s528_s16, %s528_s16, %s529_s19  }
  0x25   : > { %p140_p11 = scmp.lt.s32.totalorder %s525_s12, 5  ;;  %p743_p13 = scmp.ge.s32.totalorder %s525_s12, 1 }
  0x27   : > { %p141_p3 = pnand %p743_p13, %p140_p11 }
  0x28   : > { %s146_s20 = sand.u32 (!%p141_p3), 1, %s517_s10  }
  0x29   : > { %144 = sbr.rel (%p141_p3) target bundleno = 354 (0x162), region = 28  ;;  %s407_s21 = sshll.u32 (!%p141_p3), %s146_s20, 7 }
  0x2a   : > { %s147_s22 = scalar_lea.sflag (!%p141_p3), [#allocation3], %s146_s20  ;;  %s632_s23 = scalar_lea.vmem (!%p141_p3), [#allocation2], %s407_s21 }
  0x30   : > { %508 = dma.done.wait (%p582_p7), %s147_s22, 2048  }
  0x31   : > { %510 = vsyncadd (%p582_p7), %s147_s22, 4294965248  ;;  %s408_s25 = sshll.u32 %s398_s13, 2  ;;  %v530_v0 = vmov 0   ;;  %v209_v5 = vlaneseq  ;;  %v665_v12 = vld [vmem:[%s632_s23] sm:$0xff]  ;;  %v190_v13 = vld [vmem:[%s632_s23 + $0x8] sm:$0xff] }
  0x32   : > { %460 = vset.pattern.permute.xlu1 %v530_v0  ;;  %459 = vset.pattern.permute.xlu0 %v530_v0  ;;  %p178_p8 = scmp.lt.s32.totalorder %s408_s25, 15  ;;  %v531_v14 = vmov 0.00019607843   ;;  %v191_v16 = vld [vmem:[%s632_s23 + $0x10] sm:$0xff]  ;;  %v193_v27 = vld [vmem:[%s632_s23 + $0x20] sm:$0xff]  ;;  %v194_v28 = vld [vmem:[%s632_s23 + $0x28] sm:$0xff] }
  0x33   : > { %v210_v6 = vand.u32 127, %v209_v5  ;;  %v192_v30 = vld [vmem:[%s632_s23 + $0x18] sm:$0xff]  ;;  %v195_v31 = vld [vmem:[%s632_s23 + $0x30] sm:$0xff]  ;;  %v197_v39 = vld [vmem:[%s632_s23 + $0x40] sm:$0xff] }
  0x34   : > { %s749_s25 = smov (!%p178_p8, %s408_s25), 15  ;;  %v198_v40 = vld [vmem:[%s632_s23 + $0x48] sm:$0xff]  ;;  %v199_v41 = vld [vmem:[%s632_s23 + $0x50] sm:$0xff]  ;;  %v196_v44 = vld [vmem:[%s632_s23 + $0x38] sm:$0xff] }
  0x35   : > { %s409_s24 = sshll.u32 %s749_s25, 3  ;;  %v211_v7 = vadd.s32 128, %v210_v6  ;;  %v660_v8 = vadd.s32 256, %v210_v6  ;;  %v662_v9 = vadd.s32 384, %v210_v6  ;;  %v200_v46 = vld [vmem:[%s632_s23 + $0x58] sm:$0xff]  ;;  %v201_v51 = vld [vmem:[%s632_s23 + $0x60] sm:$0xff] }
  0x36   : > { %s181_s28 = scalar_lea.vmem %s739_s1, %s409_s24  ;;  %v202_v52 = vld [vmem:[%s632_s23 + $0x68] sm:$0xff]  ;;  %v203_v60 = vld [vmem:[%s632_s23 + $0x70] sm:$0xff]  ;;  %s187_s18 = scalar_lea.vmem %s740_s2, %s409_s24 }
  0x37   : > { %v648_v1 = vld [vmem:[%s181_s28 + $0x10] sm:$0xff]  ;;  %v650_v2 = vld [vmem:[%s181_s28] sm:$0xff]  ;;  %v654_v3 = vld [vmem:[%s181_s28 + $0x18] sm:$0xff] }
  0x38   : > { %221 = vperm.xlu1 %460, %v648_v1   ;;  %215 = vperm.xlu0 %459, %v650_v2   ;;  %v656_v4 = vld [vmem:[%s181_s28 + $0x8] sm:$0xff] }
  0x3c   : > { %224 = vperm.xlu1 %460, %v654_v3   ;;  %218 = vperm.xlu0 %459, %v656_v4  }
  0xb7   : > { %v222_v10 = vpop.permute.xlu1 %221  ;;  %v216_v11 = vpop.permute.xlu0 %215 }
  0xb8   : > { %vm234_vm0 = vcmp.eq.s32.totalorder %v210_v6, %v222_v10  ;;  %vm235_vm1 = vcmp.eq.s32.totalorder %v211_v7, %v222_v10  ;;  %vm226_vm2 = vcmp.eq.s32.totalorder %v210_v6, %v216_v11  ;;  %vm236_vm3 = vcmp.eq.s32.totalorder %v660_v8, %v222_v10 }
  0xb9   : > { %v250_v15 = vsel %vm234_vm0, 0.9, %v531_v14  ;;  %vm227_vm4 = vcmp.eq.s32.totalorder %v211_v7, %v216_v11  ;;  %vm228_vm5 = vcmp.eq.s32.totalorder %v660_v8, %v216_v11  ;;  %v242_v17 = vsel %vm226_vm2, 0.9, %v531_v14 }
  0xba   : > { %v243_v18 = vsel %vm227_vm4, 0.9, %v531_v14  ;;  %vm229_vm6 = vcmp.eq.s32.totalorder %v662_v9, %v216_v11  ;;  %v244_v19 = vsel %vm228_vm5, 0.9, %v531_v14  ;;  %v251_v20 = vsel %vm235_vm1, 0.9, %v531_v14 }
  0xbb   : > { %v225_v21 = vpop.permute.xlu1 %224  ;;  %v219_v22 = vpop.permute.xlu0 %218  ;;  %v245_v23 = vsel %vm229_vm6, 0.9, %v531_v14  ;;  %v258_v24 = vmul.f32 %v242_v17, %v665_v12  ;;  %v259_v25 = vmul.f32 %v243_v18, %v190_v13  ;;  %v260_v26 = vmul.f32 %v244_v19, %v191_v16  ;;  %v204_v11 = vld [vmem:[%s632_s23 + $0x78] sm:$0xff] }
  0xbc   : > { %vm238_vm7 = vcmp.eq.s32.totalorder %v210_v6, %v225_v21  ;;  %vm239_vm8 = vcmp.eq.s32.totalorder %v211_v7, %v225_v21  ;;  %vm230_vm9 = vcmp.eq.s32.totalorder %v210_v6, %v219_v22  ;;  %vm240_vm10 = vcmp.eq.s32.totalorder %v660_v8, %v225_v21 }
  0xbd   : > { %v254_v29 = vsel %vm238_vm7, 0.9, %v531_v14  ;;  %vm231_vm11 = vcmp.eq.s32.totalorder %v211_v7, %v219_v22  ;;  %vm232_vm12 = vcmp.eq.s32.totalorder %v660_v8, %v219_v22  ;;  %v255_v32 = vsel %vm239_vm8, 0.9, %v531_v14 }
  0xbe   : > { %v246_v33 = vsel %vm230_vm9, 0.9, %v531_v14  ;;  %v247_v34 = vsel %vm231_vm11, 0.9, %v531_v14  ;;  %v274_v35 = vadd.f32 %v259_v25, %v258_v24  ;;  %vm233_vm13 = vcmp.eq.s32.totalorder %v662_v9, %v219_v22 }
  0xbf   : > { %v248_v36 = vsel %vm232_vm12, 0.9, %v531_v14  ;;  %v262_v37 = vmul.f32 %v246_v33, %v193_v27  ;;  %v263_v38 = vmul.f32 %v247_v34, %v194_v28  ;;  %v261_v42 = vmul.f32 %v245_v23, %v192_v30 }
  0xc0   : > { %v275_v43 = vadd.f32 %v274_v35, %v260_v26  ;;  %v249_v45 = vsel %vm233_vm13, 0.9, %v531_v14  ;;  %vm237_vm14 = vcmp.eq.s32.totalorder %v662_v9, %v222_v10  ;;  %v264_v47 = vmul.f32 %v248_v36, %v195_v31 }
  0xc1   : > { %v279_v48 = vadd.f32 %v263_v38, %v262_v37  ;;  %v252_v49 = vsel %vm236_vm3, 0.9, %v531_v14  ;;  %v253_v50 = vsel %vm237_vm14, 0.9, %v531_v14  ;;  %v266_v54 = vmul.f32 %v250_v15, %v197_v39 }
  0xc2   : > { %v276_v53 = vadd.f32 %v275_v43, %v261_v42  ;;  %v267_v55 = vmul.f32 %v251_v20, %v198_v40  ;;  %v268_v56 = vmul.f32 %v252_v49, %v199_v41  ;;  %v265_v57 = vmul.f32 %v249_v45, %v196_v44 }
  0xc3   : > { %v280_v58 = vadd.f32 %v279_v48, %v264_v47  ;;  %v269_v59 = vmul.f32 %v253_v50, %v200_v46  ;;  %v256_v61 = vsel %vm240_vm10, 0.9, %v531_v14  ;;  %vm241_vm15 = vcmp.eq.s32.totalorder %v662_v9, %v225_v21 }
  0xc4   : > { %277 = vadd.xlane.f32.xlu0 %v276_v53  ;;  %v284_v62 = vadd.f32 %v267_v55, %v266_v54  ;;  %v270_v63 = vmul.f32 %v254_v29, %v201_v51  ;;  %v271_v0 = vmul.f32 %v255_v32, %v202_v52  ;;  %v272_v7 = vmul.f32 %v256_v61, %v203_v60 }
  0xc5   : > { %v281_v5 = vadd.f32 %v280_v58, %v265_v57  ;;  %v257_v13 = vsel %vm241_vm15, 0.9, %v531_v14  ;;  %v294_v18 = vmul.f32 0.00019607843, %v665_v12  ;;  %v295_v19 = vmul.f32 0.00019607843, %v193_v27 }
  0xc6   : > { %v285_v6 = vadd.f32 %v284_v62, %v268_v56  ;;  %v289_v10 = vadd.f32 %v271_v0, %v270_v63  ;;  %v273_v8 = vmul.f32 %v257_v13, %v204_v11  ;;  %vm306_vm0 = vcmp.ne.s32.totalorder %v650_v2, 0 }
  0xc7   : > { %282 = vadd.xlane.f32.xlu1 %v281_v5  ;;  %vm314_vm1 = vcmask 7168   ;;  %v296_v22 = vmul.f32 0.00019607843, %v197_v39  ;;  %vm307_vm2 = vcmp.ne.s32.totalorder %v656_v4, 0  ;;  %v297_v27 = vmul.f32 0.00019607843, %v201_v51 }
  0xc8   : > { %v286_v15 = vadd.f32 %v285_v6, %v269_v59  ;;  %v290_v16 = vadd.f32 %v289_v10, %v272_v7  ;;  %vm308_vm3 = vcmp.ne.s32.totalorder %v648_v1, 0  ;;  %vm309_vm4 = vcmp.ne.s32.totalorder %v654_v3, 0 }
  0xca   : > { %287 = vadd.xlane.f32.xlu0 %v286_v15  ;;  %v291_v17 = vadd.f32 %v290_v16, %v273_v8 }
  0xce   : > { %292 = vadd.xlane.f32.xlu0 %v291_v17 }
 0x151   : > { %v278_v9 = vpop.xlane.xlu0 %277 }
 0x152   : > { %v298_v20 = vsub.f32 %v278_v9, %v294_v18 }
 0x154   : > { %v302_v14 = vsub.f32 -0.94852406, %v298_v20  ;;  %v283_v21 = vpop.xlane.xlu1 %282 }
 0x155   : > { %v299_v23 = vsub.f32 %v283_v21, %v295_v19 }
 0x156   : > { %v310_v24 = vsel %vm306_vm0, %v302_v14, 0.0 }
 0x157   : > { %315 = vst.msk [vmem:[%s187_s18] sm:$0xff] %vm314_vm1, %v310_v24  ;;  %v303_v12 = vsub.f32 -0.94852406, %v299_v23  ;;  %v288_v25 = vpop.xlane.xlu0 %287 }
 0x158   : > { %v300_v26 = vsub.f32 %v288_v25, %v296_v22 }
 0x159   : > { %v311_v2 = vsel %vm307_vm2, %v303_v12, 0.0 }
 0x15a   : > { %316 = vst.msk [vmem:[%s187_s18 + $0x8] sm:$0xff] %vm314_vm1, %v311_v2  ;;  %v304_v28 = vsub.f32 -0.94852406, %v300_v26 }
 0x15b   : > { %v293_v29 = vpop.xlane.xlu0 %292 }
 0x15c   : > { %v312_v30 = vsel %vm308_vm3, %v304_v28, 0.0  ;;  %v301_v31 = vsub.f32 %v293_v29, %v297_v27 }
 0x15d   : > { %317 = vst.msk [vmem:[%s187_s18 + $0x10] sm:$0xff] %vm314_vm1, %v312_v30 }
 0x15e   : > { %v305_v4 = vsub.f32 -0.94852406, %v301_v31 }
 0x160   : > { %v313_v32 = vsel %vm309_vm4, %v305_v4, 0.0 }
 0x161   : > { %318 = vst.msk [vmem:[%s187_s18 + $0x18] sm:$0xff] %vm314_vm1, %v313_v32 }
 0x162 PF: > { %p12_p7 = scmp.ge.s32.totalorder %s567_s14, 6   ;;  %s744_s9 = smov %s517_s10 }
 0x163   : > { %s745_s10 = smov %s521_s11  ;;  %s746_s11 = smov %s577_s17 }
 0x164   : > { %s747_s12 = smov %s567_s14  ;;  %14 = sbr.rel (!%p12_p7) target bundleno = 3 (0x3), region = 71 }
 0x16b   :  { %341 = vsyncpa [#allocation3], 1 }
 0x16c   :  { %343 = vsyncpa [#allocation3 + $0x1], 1 }

</bundles_post_ra>
